<compile_context>
chip_gen: v5e
topology: v5e:2x2
jax: 0.10.0
libtpu: 0.0.40
codegen_flags: <defaults>
</compile_context>

<pallas_src>
import math

import jax
import jax.numpy as jnp
from jax.experimental import pallas as pl
from jax.experimental.pallas import tpu as pltpu


# ---------------------------------------------------------------------------
# Small helpers
# ---------------------------------------------------------------------------
def _round_up(x, m):
    return ((x + m - 1) // m) * m


def _vmem_capacity_bytes():
    try:
        return int(pltpu.get_tpu_info().vmem_capacity_bytes)
    except Exception:
        return 64 * 1024 * 1024  # conservative default (v7x per-core VMEM)


def _choose_chunk(T, chunk_size=None):
    """Time-chunk length: a multiple of 8, padding waste kept modest."""
    if chunk_size is not None:
        return max(8, _round_up(int(chunk_size), 8))
    for cand in (32, 16, 8):
        if _round_up(T, cand) - T <= max(T // 4, 7):
            return cand
    return 8


def _choose_batch_tile(B, est_fn, budget):
    """Largest divisor of B (<=8) fitting the VMEM budget; prefer >=2 grid
    steps on the 'parallel' batch axis so v7x's second TensorCore gets work."""
    divisors = sorted([d for d in range(1, min(B, 8) + 1) if B % d == 0],
                      reverse=True)
    preferred = [d for d in divisors if B // d >= 2] or divisors
    for d in preferred:
        if est_fn(d) <= budget:
            return d
    return preferred[-1]


def _vmem_estimate_bytes(bt, tc, d_in, H, in_bytes):
    """Rough per-grid-step VMEM footprint (double-buffered blocks + temps)."""
    six_h = 6 * H
    est = 0
    est += 2 * bt * tc * d_in * in_bytes      # x blocks
    est += 2 * d_in * six_h * in_bytes        # resident W6
    est += 2 * six_h * 4                      # resident bias
    est += 2 * bt * tc * H * 4                # h out blocks
    est += 2 * bt * H * H * 4                 # carried C (TODO(synk): pl.Buffered(1))
    est += 2 * bt * H * 4                     # carried n
    est += 2 * bt * tc * six_h * 4            # pre-activations
    est += 20 * bt * tc * H * 4               # per-gate / decay temporaries
    est += 4 * bt * tc * tc * 4               # (tc, tc) score matrices
    est += 3 * bt * H * H * 4                 # c_prev value + rank-tc update
    return est + (2 << 20)


# ---------------------------------------------------------------------------
# Fused per-layer kernel: projection GEMM + chunkwise-parallel recurrence.
# ---------------------------------------------------------------------------
def _make_mlstm_chunk_kernel(seq_len):
    """seq_len = number of *real* timesteps (time axis may be zero-padded)."""

    def kernel(x_ref, w_ref, b_ref, h_ref, c_ref, n_ref):
        bt, tc, d_in = x_ref.shape
        H = n_ref.shape[-1]
        f32 = jnp.float32

        # init_hidden(): zero the carried state at the start of each batch
        # tile's time sweep.  C/n have a constant index_map over the
        # "arbitrary" time grid axis, so they stay resident in VMEM.
        @pl.when(pl.program_id(1) == 0)
        def _init():
            c_ref[...] = jnp.zeros_like(c_ref)
            n_ref[...] = jnp.zeros_like(n_ref)

        # ------------------------------------------------------------------
        # Fused input projection: one MXU GEMM for all six gates.
        # ------------------------------------------------------------------
        x2 = x_ref[...].reshape(bt * tc, d_in)
        pre = jnp.dot(x2, w_ref[...], preferred_element_type=f32)
        pre = (pre + b_ref[...].astype(f32)).reshape(bt, tc, 6 * H)

        q = pre[:, :, 0 * H:1 * H]
        k = pre[:, :, 1 * H:2 * H] * (1.0 / math.sqrt(H))
        v = pre[:, :, 2 * H:3 * H]
        # TODO(synk): like the PyTorch reference, no xLSTM m_t log-space
        # stabilizer on the exponential input gate.
        ig = jnp.exp(pre[:, :, 3 * H:4 * H])
        fg = jax.nn.sigmoid(pre[:, :, 4 * H:5 * H])
        og = jax.nn.sigmoid(pre[:, :, 5 * H:6 * H])

        # Padded timesteps (global index >= seq_len) are made identities for
        # the recurrent state: i = 0, f = 1.  Their h rows are discarded.
        pos = (pl.program_id(1) * tc
               + jax.lax.broadcasted_iota(jnp.int32, (tc, 1), 0))
        valid = (pos < seq_len)[None, :, :]                        # (1, tc, 1)
        ig = jnp.where(valid, ig, 0.0)
        logf = jnp.where(valid, jnp.log(jnp.maximum(fg, 1e-30)), 0.0)

        # ------------------------------------------------------------------
        # Chunkwise-parallel recurrence (per-dimension decays in log space).
        # ------------------------------------------------------------------
        u_i = jax.lax.broadcasted_iota(jnp.int32, (tc, tc), 0)     # query pos
        s_i = jax.lax.broadcasted_iota(jnp.int32, (tc, tc), 1)     # key pos
        incl = jnp.broadcast_to((s_i <= u_i).astype(f32)[None], (bt, tc, tc))

        # Inclusive / exclusive cumulative log-decays (via a small matmul so
        # the cumsum stays a supported MXU op).
        b_inc = jnp.einsum("bus,bsm->bum", incl, logf,
                           preferred_element_type=f32)             # (bt,tc,H)
        b_exc = b_inc - logf
        b_end = b_inc[:, tc - 1:tc, :]                             # (bt,1,H)

        decay_in = jnp.exp(b_exc)              # chunk start -> before u (<=1)
        decay_out = jnp.exp(b_end - b_inc)     # after s -> chunk end    (<=1)
        decay_all = jnp.exp(b_end)             # whole chunk             (<=1)

        c_prev = c_ref[...]                                        # (bt,H,H)
        n_prev = n_ref[...]                                        # (bt,1,H)

        # Inter-chunk contribution (state carried from previous chunks) — MXU.
        qbar = q * decay_in
        h_inter = jnp.einsum("bum,bmj->buj", qbar, c_prev,
                             preferred_element_type=f32)
        d_inter = jnp.sum(qbar * n_prev, axis=2, keepdims=True)    # (bt,tc,1)

        # Intra-chunk contribution: relative decays factored around the chunk
        # midpoint so both exp() factors stay representable.
        # TODO(synk): if the mean f within a chunk is < ~exp(-120/tc) the
        # clamp kicks in (graceful underestimate of near-zero terms);
        # FLA-style sub-chunking would make it exact for pathological gates.
        shift = 0.5 * b_end
        q_sc = q * jnp.exp(jnp.minimum(b_exc - shift, 60.0))
        w_sc = ig * jnp.exp(jnp.minimum(shift - b_inc, 60.0))
        sv = jnp.einsum("bum,bsm->bus", q_sc, w_sc * v,
                        preferred_element_type=f32)
        sk = jnp.einsum("bum,bsm->bus", q_sc, w_sc * k,
                        preferred_element_type=f32)
        causal = (s_i < u_i)[None, :, :]                           # strict
        sv = jnp.where(causal, sv, 0.0)
        sk = jnp.where(causal, sk, 0.0)
        h_intra = jnp.einsum("bus,bsj->buj", sv, k,
                             preferred_element_type=f32)
        d_intra = jnp.sum(sk, axis=2, keepdims=True)

        # h_t = o_t * (q_t^T C_{t-1}) / max(|n_{t-1} . q_t|, 1)  (exact divide)
        denom = jnp.maximum(jnp.abs(d_inter + d_intra), 1.0)
        h_ref[...] = (og * (h_inter + h_intra) / denom).astype(h_ref.dtype)

        # Rank-tc state update to the chunk end, written in place (one load +
        # one store of C per chunk; the outer-product sum goes to the MXU).
        c_ref[...] = (decay_all[:, 0, :, None] * c_prev
                      + jnp.einsum("bsm,bsj->bmj", ig * v * decay_out, k,
                                   preferred_element_type=f32))
        n_ref[...] = (decay_all * n_prev
                      + jnp.sum(ig * k * decay_out, axis=1, keepdims=True))

    return kernel


# ---------------------------------------------------------------------------
# Wrappers
# ---------------------------------------------------------------------------
def mlstm_layer_forward(x_pad, w6, b6, seq_len, tc, matmul_dtype=jnp.bfloat16):
    """x_pad: (B, T_pad, D_in), T_pad % tc == 0.  Returns (h_pad, C, n)."""
    B, T_pad, d_in = x_pad.shape
    H = w6.shape[1] // 6
    six_h = 6 * H
    in_bytes = jnp.dtype(matmul_dtype).itemsize

    cap = _vmem_capacity_bytes()
    budget = int(0.7 * cap)
    est_fn = lambda bt: _vmem_estimate_bytes(bt, tc, d_in, H, in_bytes)
    bt = _choose_batch_tile(B, est_fn, budget)
    est = est_fn(bt)

    cparams_kwargs = dict(dimension_semantics=("parallel", "arbitrary"))
    if est > 24 * 1024 * 1024:
        cparams_kwargs["vmem_limit_bytes"] = int(
            min(0.9 * cap, max(2 * est, 48 * 1024 * 1024)))
    compiler_params = pltpu.CompilerParams(**cparams_kwargs)

    kernel = _make_mlstm_chunk_kernel(seq_len)
    grid = (B // bt, T_pad // tc)

    h_pad, c_fin, n_fin = pl.pallas_call(
        kernel,
        out_shape=(
            jax.ShapeDtypeStruct((B, T_pad, H), jnp.float32),
            jax.ShapeDtypeStruct((B, H, H), jnp.float32),
            jax.ShapeDtypeStruct((B, 1, H), jnp.float32),
        ),
        grid_spec=pltpu.PrefetchScalarGridSpec(
            num_scalar_prefetch=0,
            grid=grid,
            in_specs=[
                pl.BlockSpec((bt, tc, d_in), lambda b, t: (b, t, 0)),
                pl.BlockSpec((d_in, six_h), lambda b, t: (0, 0)),  # resident W
                pl.BlockSpec((1, six_h), lambda b, t: (0, 0)),     # resident b
            ],
            out_specs=[
                pl.BlockSpec((bt, tc, H), lambda b, t: (b, t, 0)),
                pl.BlockSpec((bt, H, H), lambda b, t: (b, 0, 0)),  # carried C
                pl.BlockSpec((bt, 1, H), lambda b, t: (b, 0, 0)),  # carried n
            ],
        ),
        compiler_params=compiler_params,
    )(x_pad.astype(matmul_dtype), w6.astype(matmul_dtype), b6)
    return h_pad, c_fin, n_fin[:, 0, :]


def mlstm_forward(params, x_btd, chunk_size=None, matmul_dtype=jnp.bfloat16):
    """Full mLSTM layer stack.  x_btd: (B, T, input_size) — PyTorch convention.

    Returns (output (B, T, H), hidden_state list of (h_T, C, n) per layer).
    """
    B, T, _ = x_btd.shape
    tc = _choose_chunk(T, chunk_size)
    T_pad = _round_up(T, tc)
    x = x_btd
    if T_pad != T:
        x = jnp.pad(x, ((0, 0), (0, T_pad - T), (0, 0)))
    hidden_state = []
    for (w6, b6) in params:
        h_pad, c_fin, n_fin = mlstm_layer_forward(
            x, w6, b6, seq_len=T, tc=tc, matmul_dtype=matmul_dtype)
        hidden_state.append((h_pad[:, T - 1, :], c_fin, n_fin))
        # TODO(synk): inter-layer nn.Dropout(p=0.0) is the identity; omitted.
        x = h_pad
    return x[:, :T, :], hidden_state


# ---------------------------------------------------------------------------
# Deterministic parameter initialization (mirrors the module's __init__ shapes;
# weight_ih / weight_hh / bias are unused in forward() and therefore omitted).
# Stored fused: W6 (D_in, 6H), b6 (1, 6H) in [q, k, v, i, f, o] order.
# ---------------------------------------------------------------------------
def _xavier_uniform(key, fan_out, fan_in):
    limit = math.sqrt(6.0 / (fan_in + fan_out))
    return jax.random.uniform(key, (fan_out, fan_in), jnp.float32, -limit, limit)


def init_mlstm_params(key, input_size, hidden_size, num_layers):
    params = []
    for layer in range(num_layers):
        d_in = input_size if layer == 0 else hidden_size
        key, *wkeys = jax.random.split(key, 7)
        key, *bkeys = jax.random.split(key, 4)
        ws = [_xavier_uniform(wkeys[j], hidden_size, d_in).T for j in range(6)]
        w6 = jnp.concatenate(ws, axis=1)                           # (D_in, 6H)
        bound = 1.0 / math.sqrt(d_in)
        zeros = jnp.zeros((1, hidden_size), jnp.float32)           # q/k/v biases zeroed
        b_i = jax.random.uniform(bkeys[0], (1, hidden_size), jnp.float32, -bound, bound)
        b_f = jax.random.uniform(bkeys[1], (1, hidden_size), jnp.float32, -bound, bound)
        b_o = jax.random.uniform(bkeys[2], (1, hidden_size), jnp.float32, -bound, bound)
        b6 = jnp.concatenate([zeros, zeros, zeros, b_i, b_f, b_o], axis=1)  # (1, 6H)
        params.append((w6, b6))
    return params


# ---------------------------------------------------------------------------
# Pure-JAX per-timestep reference (same intended semantics) for the check.
# ---------------------------------------------------------------------------
def mlstm_ref(params, x_btd, matmul_dtype=jnp.float32):
    x = x_btd
    hidden = []
    for (w6, b6) in params:
        B, T, _ = x.shape
        H = w6.shape[1] // 6
        c = jnp.zeros((B, H, H), jnp.float32)
        n = jnp.zeros((B, H), jnp.float32)
        wb = w6.astype(matmul_dtype)
        outs = []
        for t in range(T):
            xt = x[:, t, :].astype(matmul_dtype)
            p = jnp.dot(xt, wb, preferred_element_type=jnp.float32) + b6
            q = p[:, 0:H]
            k = p[:, H:2 * H] * (1.0 / math.sqrt(H))
            v = p[:, 2 * H:3 * H]
            ig = jnp.exp(p[:, 3 * H:4 * H])
            fg = jax.nn.sigmoid(p[:, 4 * H:5 * H])
            og = jax.nn.sigmoid(p[:, 5 * H:6 * H])
            h_tilde = jnp.einsum("bm,bmj->bj", q, c)
            denom = jnp.maximum(jnp.abs(jnp.sum(n * q, axis=-1, keepdims=True)), 1.0)
            h = og * (h_tilde / denom)
            n = fg * n + ig * k
            c = fg[:, :, None] * c + (ig * v)[:, :, None] * k[:, None, :]
            outs.append(h)
        x = jnp.stack(outs, axis=1)
        hidden.append((x[:, -1], c, n))
    return x, hidden


if __name__ == "__main__":
    # T=13 with chunk_size=8 -> two time chunks (exercises the carried C/n
    # handoff) plus three padded, masked tail steps; B=2 with bt=1 -> two
    # steps on the "parallel" batch grid axis.
    B, T, INPUT, HIDDEN, LAYERS = 2, 13, 16, 32, 2
    key = jax.random.PRNGKey(0)
    kx, kp = jax.random.split(key)
    x = jax.random.normal(kx, (B, T, INPUT), jnp.float32)
    params = init_mlstm_params(kp, INPUT, HIDDEN, LAYERS)

    out, hidden = mlstm_forward(params, x, chunk_size=8,
                                matmul_dtype=jnp.bfloat16)
    out = jax.block_until_ready(out)
    assert out.shape == (B, T, HIDDEN), out.shape

    # Reference mirrors the bf16 projection inputs (the documented MXU
    # default); the 2e-2 bound is dominated by bf16 rounding of the
    # layer-1 -> layer-2 handoff and of the projection inputs.  With
    # matmul_dtype=float32 the kernel matches the pure-f32 reference to ~1e-4.
    ref_out, ref_hidden = mlstm_ref(params, x, matmul_dtype=jnp.bfloat16)
    tol = dict(rtol=2e-2, atol=2e-2)
    assert jnp.allclose(out, ref_out, **tol), \
        float(jnp.max(jnp.abs(out - ref_out)))
    for (h_l, c_l, n_l), (rh, rc, rn) in zip(hidden, ref_hidden):
        assert h_l.shape == (B, HIDDEN) and c_l.shape == (B, HIDDEN, HIDDEN)
        assert n_l.shape == (B, HIDDEN)
        assert jnp.allclose(h_l, rh, **tol), float(jnp.max(jnp.abs(h_l - rh)))
        assert jnp.allclose(c_l, rc, **tol), float(jnp.max(jnp.abs(c_l - rc)))
        assert jnp.allclose(n_l, rn, **tol), float(jnp.max(jnp.abs(n_l - rn)))

    print("KERNEL_OK")
</pallas_src>

<mosaic_0001>
module attributes {stable_mosaic.version = 11 : i64} {
  func.func @kernel(%arg0: i32, %arg1: i32, %arg2: memref<1x8x16xbf16, #tpu.memory_space<vmem>>, %arg3: memref<16x192xbf16, #tpu.memory_space<vmem>>, %arg4: memref<1x192xf32, #tpu.memory_space<vmem>>, %arg5: memref<1x8x32xf32, #tpu.memory_space<vmem>>, %arg6: memref<1x32x32xf32, #tpu.memory_space<vmem>>, %arg7: memref<1x1x32xf32, #tpu.memory_space<vmem>>) attributes {dimension_semantics = [#tpu.dimension_semantics<parallel>, #tpu.dimension_semantics<arbitrary>], iteration_bounds = array<i64: 2, 2>, scalar_prefetch = 0 : i64, scratch_operands = 0 : i64, tpu.core_type = #tpu.core_type<tc>, window_params = [{transform_indices = @transform_0, window_bounds = array<i64: 1, 8, 16>}, {pipeline_mode = #tpu.pipeline_mode<synchronous>, transform_indices = @transform_1, window_bounds = array<i64: 16, 192>}, {pipeline_mode = #tpu.pipeline_mode<synchronous>, transform_indices = @transform_2, window_bounds = array<i64: 1, 192>}, {transform_indices = @transform_3, window_bounds = array<i64: 1, 8, 32>}, {transform_indices = @transform_4, window_bounds = array<i64: 1, 32, 32>}, {transform_indices = @transform_5, window_bounds = array<i64: 1, 1, 32>}]} {
    %c0_i32 = arith.constant 0 : i32
    %0 = arith.cmpi eq, %arg1, %c0_i32 : i32
    %1 = arith.extui %0 : i1 to i32
    %c0_i32_0 = arith.constant 0 : i32
    %2 = arith.cmpi ne, %1, %c0_i32_0 : i32
    scf.if %2 {
      %cst_43 = arith.constant 0.000000e+00 : f32
      %122 = vector.broadcast %cst_43 : f32 to vector<1x32x32xf32>
      %c0_44 = arith.constant 0 : index
      %c0_45 = arith.constant 0 : index
      %c0_46 = arith.constant 0 : index
      %123 = vector.load %arg6[%c0_44, %c0_45, %c0_46] : memref<1x32x32xf32, #tpu.memory_space<vmem>>, vector<1x32x32xf32>
      tpu.vector_store %arg6[%c0_44, %c0_45, %c0_46], %122 {strides = array<i32>} : memref<1x32x32xf32, #tpu.memory_space<vmem>>, vector<1x32x32xf32>,
      %cst_47 = arith.constant 0.000000e+00 : f32
      %124 = vector.broadcast %cst_47 : f32 to vector<1x1x32xf32>
      %c0_48 = arith.constant 0 : index
      %c0_49 = arith.constant 0 : index
      %c0_50 = arith.constant 0 : index
      %125 = vector.load %arg7[%c0_48, %c0_49, %c0_50] : memref<1x1x32xf32, #tpu.memory_space<vmem>>, vector<1x1x32xf32>
      tpu.vector_store %arg7[%c0_48, %c0_49, %c0_50], %124 {strides = array<i32>} : memref<1x1x32xf32, #tpu.memory_space<vmem>>, vector<1x1x32xf32>,
    } else {
    }
    %c0 = arith.constant 0 : index
    %c0_1 = arith.constant 0 : index
    %c0_2 = arith.constant 0 : index
    %3 = vector.load %arg2[%c0, %c0_1, %c0_2] : memref<1x8x16xbf16, #tpu.memory_space<vmem>>, vector<1x8x16xbf16>
    %4 = vector.shape_cast %3 : vector<1x8x16xbf16> to vector<8x16xbf16>
    %c0_3 = arith.constant 0 : index
    %c0_4 = arith.constant 0 : index
    %5 = vector.load %arg3[%c0_3, %c0_4] : memref<16x192xbf16, #tpu.memory_space<vmem>>, vector<16x192xbf16>
    %cst = arith.constant dense<0.000000e+00> : vector<8x192xf32>
    %6 = tpu.matmul %4, %5, %cst {dimension_numbers = #tpu.dot_dimension_numbers<[1], [0], [0], [1], [0, 0, 1, 1], [], []>} : vector<8x16xbf16>, vector<16x192xbf16>, vector<8x192xf32> -> vector<8x192xf32>
    %c0_5 = arith.constant 0 : index
    %c0_6 = arith.constant 0 : index
    %7 = vector.load %arg4[%c0_5, %c0_6] : memref<1x192xf32, #tpu.memory_space<vmem>>, vector<1x192xf32>
    %8 = vector.broadcast %7 : vector<1x192xf32> to vector<8x192xf32>
    %9 = arith.addf %6, %8 : vector<8x192xf32>
    %10 = vector.shape_cast %9 : vector<8x192xf32> to vector<1x8x192xf32>
    %11 = vector.extract_strided_slice %10 {offsets = [0, 0, 0], sizes = [1, 8, 32], strides = [1, 1, 1]} : vector<1x8x192xf32> to vector<1x8x32xf32>
    %12 = vector.extract_strided_slice %10 {offsets = [0, 0, 32], sizes = [1, 8, 32], strides = [1, 1, 1]} : vector<1x8x192xf32> to vector<1x8x32xf32>
    %cst_7 = arith.constant 0.176776692 : f32
    %13 = vector.broadcast %cst_7 : f32 to vector<1x8x32xf32>
    %14 = arith.mulf %12, %13 : vector<1x8x32xf32>
    %15 = vector.extract_strided_slice %10 {offsets = [0, 0, 64], sizes = [1, 8, 32], strides = [1, 1, 1]} : vector<1x8x192xf32> to vector<1x8x32xf32>
    %16 = vector.extract_strided_slice %10 {offsets = [0, 0, 96], sizes = [1, 8, 32], strides = [1, 1, 1]} : vector<1x8x192xf32> to vector<1x8x32xf32>
    %17 = math.exp %16 : vector<1x8x32xf32>
    %18 = vector.extract_strided_slice %10 {offsets = [0, 0, 128], sizes = [1, 8, 32], strides = [1, 1, 1]} : vector<1x8x192xf32> to vector<1x8x32xf32>
    %19 = arith.negf %18 : vector<1x8x32xf32>
    %20 = math.exp %19 : vector<1x8x32xf32>
    %cst_8 = arith.constant 1.000000e+00 : f32
    %21 = vector.broadcast %cst_8 : f32 to vector<1x8x32xf32>
    %22 = arith.addf %21, %20 : vector<1x8x32xf32>
    %23 = arith.divf %21, %22 : vector<1x8x32xf32>
    %24 = vector.extract_strided_slice %10 {offsets = [0, 0, 160], sizes = [1, 8, 32], strides = [1, 1, 1]} : vector<1x8x192xf32> to vector<1x8x32xf32>
    %25 = arith.negf %24 : vector<1x8x32xf32>
    %26 = math.exp %25 : vector<1x8x32xf32>
    %cst_9 = arith.constant 1.000000e+00 : f32
    %27 = vector.broadcast %cst_9 : f32 to vector<1x8x32xf32>
    %28 = arith.addf %27, %26 : vector<1x8x32xf32>
    %29 = arith.divf %27, %28 : vector<1x8x32xf32>
    %c8_i32 = arith.constant 8 : i32
    %30 = arith.muli %arg1, %c8_i32 : i32
    %31 = tpu.iota {dimensions = array<i32: 0>} : vector<8x1xi32>
    %32 = vector.broadcast %30 : i32 to vector<8x1xi32>
    %33 = arith.addi %32, %31 : vector<8x1xi32>
    %c13_i32 = arith.constant 13 : i32
    %34 = vector.broadcast %c13_i32 : i32 to vector<8x1xi32>
    %35 = arith.cmpi slt, %33, %34 : vector<8x1xi32>
    %36 = vector.shape_cast %35 : vector<8x1xi1> to vector<1x8x1xi1>
    %cst_10 = arith.constant 0.000000e+00 : f32
    %37 = vector.shape_cast %36 : vector<1x8x1xi1> to vector<1x8x1xi1>
    %38 = vector.broadcast %37 : vector<1x8x1xi1> to vector<1x8x32xi1>
    %39 = vector.broadcast %cst_10 : f32 to vector<1x8x32xf32>
    %40 = arith.select %38, %17, %39 : vector<1x8x32xi1>, vector<1x8x32xf32>
    %cst_11 = arith.constant 1.000000e-30 : f32
    %41 = vector.broadcast %cst_11 : f32 to vector<1x8x32xf32>
    %42 = arith.maximumf %23, %41 : vector<1x8x32xf32>
    %43 = math.log %42 : vector<1x8x32xf32>
    %cst_12 = arith.constant 0.000000e+00 : f32
    %44 = vector.shape_cast %36 : vector<1x8x1xi1> to vector<1x8x1xi1>
    %45 = vector.broadcast %44 : vector<1x8x1xi1> to vector<1x8x32xi1>
    %46 = vector.broadcast %cst_12 : f32 to vector<1x8x32xf32>
    %47 = arith.select %45, %43, %46 : vector<1x8x32xi1>, vector<1x8x32xf32>
    %48 = tpu.iota {dimensions = array<i32: 0>} : vector<8x8xi32>
    %49 = tpu.iota {dimensions = array<i32: 1>} : vector<8x8xi32>
    %50 = arith.cmpi sle, %49, %48 : vector<8x8xi32>
    %51 = arith.extui %50 : vector<8x8xi1> to vector<8x8xi32>
    %52 = arith.sitofp %51 : vector<8x8xi32> to vector<8x8xf32>
    %53 = vector.shape_cast %52 : vector<8x8xf32> to vector<1x8x8xf32>
    "tpu.trace_start"() <{level = 10 : i32, message = "bus,bsm->bum"}> : () -> ()
    %cst_13 = arith.constant dense<0.000000e+00> : vector<1x8x32xf32>
    %54 = tpu.matmul %53, %47, %cst_13 {dimension_numbers = #tpu.dot_dimension_numbers<[2], [1], [1], [2], [0, 0, 0, 1, 1, 2], [0], [0]>} : vector<1x8x8xf32>, vector<1x8x32xf32>, vector<1x8x32xf32> -> vector<1x8x32xf32>
    "tpu.trace_stop"() : () -> ()
    %55 = arith.subf %54, %47 : vector<1x8x32xf32>
    %56 = vector.extract_strided_slice %54 {offsets = [0, 7, 0], sizes = [1, 1, 32], strides = [1, 1, 1]} : vector<1x8x32xf32> to vector<1x1x32xf32>
    %57 = math.exp %55 : vector<1x8x32xf32>
    %58 = vector.broadcast %56 : vector<1x1x32xf32> to vector<1x8x32xf32>
    %59 = arith.subf %58, %54 : vector<1x8x32xf32>
    %60 = math.exp %59 : vector<1x8x32xf32>
    %61 = math.exp %56 : vector<1x1x32xf32>
    %c0_14 = arith.constant 0 : index
    %c0_15 = arith.constant 0 : index
    %c0_16 = arith.constant 0 : index
    %62 = vector.load %arg6[%c0_14, %c0_15, %c0_16] : memref<1x32x32xf32, #tpu.memory_space<vmem>>, vector<1x32x32xf32>
    %c0_17 = arith.constant 0 : index
    %c0_18 = arith.constant 0 : index
    %c0_19 = arith.constant 0 : index
    %63 = vector.load %arg7[%c0_17, %c0_18, %c0_19] : memref<1x1x32xf32, #tpu.memory_space<vmem>>, vector<1x1x32xf32>
    %64 = arith.mulf %11, %57 : vector<1x8x32xf32>
    "tpu.trace_start"() <{level = 10 : i32, message = "bum,bmj->buj"}> : () -> ()
    %cst_20 = arith.constant dense<0.000000e+00> : vector<1x8x32xf32>
    %65 = tpu.matmul %64, %62, %cst_20 {dimension_numbers = #tpu.dot_dimension_numbers<[2], [1], [1], [2], [0, 0, 0, 1, 1, 2], [0], [0]>} : vector<1x8x32xf32>, vector<1x32x32xf32>, vector<1x8x32xf32> -> vector<1x8x32xf32>
    "tpu.trace_stop"() : () -> ()
    %66 = vector.broadcast %63 : vector<1x1x32xf32> to vector<1x8x32xf32>
    %67 = arith.mulf %64, %66 : vector<1x8x32xf32>
    %cst_21 = arith.constant dense<0.000000e+00> : vector<1x8xf32>
    %68 = vector.multi_reduction <add>, %67, %cst_21 [2] : vector<1x8x32xf32> to vector<1x8xf32>
    %69 = vector.shape_cast %68 : vector<1x8xf32> to vector<1x8x1xf32>
    %cst_22 = arith.constant 5.000000e-01 : f32
    %70 = vector.broadcast %cst_22 : f32 to vector<1x1x32xf32>
    %71 = arith.mulf %70, %56 : vector<1x1x32xf32>
    %72 = vector.broadcast %71 : vector<1x1x32xf32> to vector<1x8x32xf32>
    %73 = arith.subf %55, %72 : vector<1x8x32xf32>
    %cst_23 = arith.constant 6.000000e+01 : f32
    %74 = vector.broadcast %cst_23 : f32 to vector<1x8x32xf32>
    %75 = arith.minimumf %73, %74 : vector<1x8x32xf32>
    %76 = math.exp %75 : vector<1x8x32xf32>
    %77 = arith.mulf %11, %76 : vector<1x8x32xf32>
    %78 = vector.broadcast %71 : vector<1x1x32xf32> to vector<1x8x32xf32>
    %79 = arith.subf %78, %54 : vector<1x8x32xf32>
    %cst_24 = arith.constant 6.000000e+01 : f32
    %80 = vector.broadcast %cst_24 : f32 to vector<1x8x32xf32>
    %81 = arith.minimumf %79, %80 : vector<1x8x32xf32>
    %82 = math.exp %81 : vector<1x8x32xf32>
    %83 = arith.mulf %40, %82 : vector<1x8x32xf32>
    %84 = arith.mulf %83, %15 : vector<1x8x32xf32>
    "tpu.trace_start"() <{level = 10 : i32, message = "bum,bsm->bus"}> : () -> ()
    %cst_25 = arith.constant dense<0.000000e+00> : vector<1x8x8xf32>
    %85 = tpu.matmul %77, %84, %cst_25 {dimension_numbers = #tpu.dot_dimension_numbers<[2], [2], [1], [1], [0, 0, 0, 1, 1, 1], [0], [0]>} : vector<1x8x32xf32>, vector<1x8x32xf32>, vector<1x8x8xf32> -> vector<1x8x8xf32>
    "tpu.trace_stop"() : () -> ()
    %86 = arith.mulf %83, %14 : vector<1x8x32xf32>
    "tpu.trace_start"() <{level = 10 : i32, message = "bum,bsm->bus"}> : () -> ()
    %cst_26 = arith.constant dense<0.000000e+00> : vector<1x8x8xf32>
    %87 = tpu.matmul %77, %86, %cst_26 {dimension_numbers = #tpu.dot_dimension_numbers<[2], [2], [1], [1], [0, 0, 0, 1, 1, 1], [0], [0]>} : vector<1x8x32xf32>, vector<1x8x32xf32>, vector<1x8x8xf32> -> vector<1x8x8xf32>
    "tpu.trace_stop"() : () -> ()
    %88 = arith.cmpi slt, %49, %48 : vector<8x8xi32>
    %89 = vector.shape_cast %88 : vector<8x8xi1> to vector<1x8x8xi1>
    %cst_27 = arith.constant 0.000000e+00 : f32
    %90 = vector.broadcast %cst_27 : f32 to vector<1x8x8xf32>
    %91 = arith.select %89, %85, %90 : vector<1x8x8xi1>, vector<1x8x8xf32>
    %cst_28 = arith.constant 0.000000e+00 : f32
    %92 = vector.broadcast %cst_28 : f32 to vector<1x8x8xf32>
    %93 = arith.select %89, %87, %92 : vector<1x8x8xi1>, vector<1x8x8xf32>
    "tpu.trace_start"() <{level = 10 : i32, message = "bus,bsj->buj"}> : () -> ()
    %cst_29 = arith.constant dense<0.000000e+00> : vector<1x8x32xf32>
    %94 = tpu.matmul %91, %14, %cst_29 {dimension_numbers = #tpu.dot_dimension_numbers<[2], [1], [1], [2], [0, 0, 0, 1, 1, 2], [0], [0]>} : vector<1x8x8xf32>, vector<1x8x32xf32>, vector<1x8x32xf32> -> vector<1x8x32xf32>
    "tpu.trace_stop"() : () -> ()
    %cst_30 = arith.constant dense<0.000000e+00> : vector<1x8xf32>
    %95 = vector.multi_reduction <add>, %93, %cst_30 [2] : vector<1x8x8xf32> to vector<1x8xf32>
    %96 = vector.shape_cast %95 : vector<1x8xf32> to vector<1x8x1xf32>
    %97 = arith.addf %69, %96 : vector<1x8x1xf32>
    %98 = math.absf %97 : vector<1x8x1xf32>
    %cst_31 = arith.constant 1.000000e+00 : f32
    %99 = vector.broadcast %cst_31 : f32 to vector<1x8x1xf32>
    %100 = arith.maximumf %98, %99 : vector<1x8x1xf32>
    %101 = arith.addf %65, %94 : vector<1x8x32xf32>
    %102 = arith.mulf %29, %101 : vector<1x8x32xf32>
    %103 = vector.broadcast %100 : vector<1x8x1xf32> to vector<1x8x32xf32>
    %104 = arith.divf %102, %103 : vector<1x8x32xf32>
    %c0_32 = arith.constant 0 : index
    %c0_33 = arith.constant 0 : index
    %c0_34 = arith.constant 0 : index
    %105 = vector.load %arg5[%c0_32, %c0_33, %c0_34] : memref<1x8x32xf32, #tpu.memory_space<vmem>>, vector<1x8x32xf32>
    tpu.vector_store %arg5[%c0_32, %c0_33, %c0_34], %104 {strides = array<i32>} : memref<1x8x32xf32, #tpu.memory_space<vmem>>, vector<1x8x32xf32>,
    %106 = vector.shape_cast %61 : vector<1x1x32xf32> to vector<1x32xf32>
    %107 = vector.shape_cast %106 : vector<1x32xf32> to vector<1x32x1xf32>
    %108 = vector.broadcast %107 : vector<1x32x1xf32> to vector<1x32x32xf32>
    %109 = arith.mulf %108, %62 : vector<1x32x32xf32>
    %110 = arith.mulf %40, %15 : vector<1x8x32xf32>
    %111 = arith.mulf %110, %60 : vector<1x8x32xf32>
    "tpu.trace_start"() <{level = 10 : i32, message = "bsm,bsj->bmj"}> : () -> ()
    %cst_35 = arith.constant dense<0.000000e+00> : vector<1x32x32xf32>
    %112 = tpu.matmul %111, %14, %cst_35 {dimension_numbers = #tpu.dot_dimension_numbers<[1], [1], [2], [2], [0, 0, 0, 2, 1, 2], [0], [0]>} : vector<1x8x32xf32>, vector<1x8x32xf32>, vector<1x32x32xf32> -> vector<1x32x32xf32>
    "tpu.trace_stop"() : () -> ()
    %113 = arith.addf %109, %112 : vector<1x32x32xf32>
    %c0_36 = arith.constant 0 : index
    %c0_37 = arith.constant 0 : index
    %c0_38 = arith.constant 0 : index
    %114 = vector.load %arg6[%c0_36, %c0_37, %c0_38] : memref<1x32x32xf32, #tpu.memory_space<vmem>>, vector<1x32x32xf32>
    tpu.vector_store %arg6[%c0_36, %c0_37, %c0_38], %113 {strides = array<i32>} : memref<1x32x32xf32, #tpu.memory_space<vmem>>, vector<1x32x32xf32>,
    %115 = arith.mulf %61, %63 : vector<1x1x32xf32>
    %116 = arith.mulf %40, %14 : vector<1x8x32xf32>
    %117 = arith.mulf %116, %60 : vector<1x8x32xf32>
    %cst_39 = arith.constant dense<0.000000e+00> : vector<1x32xf32>
    %118 = vector.multi_reduction <add>, %117, %cst_39 [1] : vector<1x8x32xf32> to vector<1x32xf32>
    %119 = vector.shape_cast %118 : vector<1x32xf32> to vector<1x1x32xf32>
    %120 = arith.addf %115, %119 : vector<1x1x32xf32>
    %c0_40 = arith.constant 0 : index
    %c0_41 = arith.constant 0 : index
    %c0_42 = arith.constant 0 : index
    %121 = vector.load %arg7[%c0_40, %c0_41, %c0_42] : memref<1x1x32xf32, #tpu.memory_space<vmem>>, vector<1x1x32xf32>
    tpu.vector_store %arg7[%c0_40, %c0_41, %c0_42], %120 {strides = array<i32>} : memref<1x1x32xf32, #tpu.memory_space<vmem>>, vector<1x1x32xf32>,
    return
  }
  func.func @transform_0(%arg0: i32, %arg1: i32) -> (i32, i32, i32) {
    %c0_i32 = arith.constant 0 : i32
    %c0_i32_0 = arith.constant 0 : i32
    return %arg0, %arg1, %c0_i32 : i32, i32, i32
  }
  func.func @transform_1(%arg0: i32, %arg1: i32) -> (i32, i32) {
    %c0_i32 = arith.constant 0 : i32
    %c0_i32_0 = arith.constant 0 : i32
    %c0_i32_1 = arith.constant 0 : i32
    return %c0_i32, %c0_i32_0 : i32, i32
  }
  func.func @transform_2(%arg0: i32, %arg1: i32) -> (i32, i32) {
    %c0_i32 = arith.constant 0 : i32
    %c0_i32_0 = arith.constant 0 : i32
    %c0_i32_1 = arith.constant 0 : i32
    return %c0_i32, %c0_i32_0 : i32, i32
  }
  func.func @transform_3(%arg0: i32, %arg1: i32) -> (i32, i32, i32) {
    %c0_i32 = arith.constant 0 : i32
    %c0_i32_0 = arith.constant 0 : i32
    return %arg0, %arg1, %c0_i32 : i32, i32, i32
  }
  func.func @transform_4(%arg0: i32, %arg1: i32) -> (i32, i32, i32) {
    %c0_i32 = arith.constant 0 : i32
    %c0_i32_0 = arith.constant 0 : i32
    %c0_i32_1 = arith.constant 0 : i32
    return %arg0, %c0_i32, %c0_i32_0 : i32, i32, i32
  }
  func.func @transform_5(%arg0: i32, %arg1: i32) -> (i32, i32, i32) {
    %c0_i32 = arith.constant 0 : i32
    %c0_i32_0 = arith.constant 0 : i32
    %c0_i32_1 = arith.constant 0 : i32
    return %arg0, %c0_i32, %c0_i32_0 : i32, i32, i32
  }
}

</mosaic_0001>

<bundles_post_ra>
// kernel: tpu_custom_call.1
= control target key start
LH: loop header
LB: loop body
LE: loop exit
PB: predicated region body
PF: predicated region fallthrough
CT: control target
= control target key end

     0   :  { %s1896_s0 = inlined_call_operand.hbm [shape: bf16[2,16,16], index: 0, kind: input, shape index: {}]   ;;  %s1897_s1 = inlined_call_operand.hbm [shape: bf16[16,192], index: 1, kind: input, shape index: {}]   ;;  %s1898_s2 = inlined_call_operand.hbm [shape: f32[1,192], index: 2, kind: input, shape index: {}]   ;;  %s1899_s3 = inlined_call_operand.hbm [shape: f32[2,16,32], index: 3, kind: output, shape index: {0}]   ;;  %s1900_s4 = inlined_call_operand.hbm [shape: f32[2,32,32], index: 4, kind: output, shape index: {1}]   ;;  %s1901_s5 = inlined_call_operand.hbm [shape: f32[2,1,32], index: 5, kind: output, shape index: {2}]  }
   0x1   :  { %1910 = sst [smem:[#allocation23_spill]] %s1897_s1 }
   0x2   :  { %1911 = sst [smem:[#allocation24_spill]] %s1898_s2 }
   0x3   :  { %1912 = sst [smem:[#allocation25_spill]] %s1899_s3 }
   0x4   :  { %11 = vsyncpa [#allocation3], 0 }
   0x5   :  { %13 = vsyncpa [#allocation3 + $0x1], 0 }
   0x6   :  { %14 = vsyncpa [#allocation6], 0 }
   0x7   :  { %15 = vsyncpa [#allocation4], 0 }
   0x8   :  { %17 = vsyncpa [#allocation4 + $0x1], 0 }
   0x9   :  { %18 = vsyncpa [#allocation10], 0 }
   0xa   :  { %20 = vsyncpa [#allocation10 + $0x1], 0  ;;  %s1514_s18 = smov 0   ;;  %s1516_s19 = smov 0  }
   0xb   :  { %s1518_s20 = smov 0   ;;  %s1520_s21 = smov 0  }
   0xc   :  { %s1522_s22 = smov 0   ;;  %s1524_s23 = smov 0  }
   0xd   :  { %s1526_s24 = smov 0   ;;  %s1528_s25 = smov 0  }
   0xe   :  { %s1530_s26 = smov 0   ;;  %s1532_s27 = smov 0  }
   0xf   :  { %s1534_s28 = smov 0  }
  0x10 LB: > { %1913 = sst [smem:[#allocation16_spill]] %s1439_s20  ;;  %s1570_s29 = sadd.s32 4294967295, %s1471_s28   ;;  %s1471_s28 = sphi %s1534_s28, %s26_s28   ;;  %s1467_s27 = sphi %s1532_s27, %s1950_s27   ;;  %s1463_s26 = sphi %s1530_s26, %s1949_s26   ;;  %s1459_s25 = sphi %s1528_s25, %s1948_s25   ;;  %s1455_s24 = sphi %s1526_s24, %s1947_s24   ;;  %s1451_s23 = sphi %s1524_s23, %s1946_s23   ;;  %s1447_s22 = sphi %s1522_s22, %s1945_s22   ;;  %s1443_s21 = sphi %s1520_s21, %s1944_s21   ;;  %s1439_s20 = sphi %s1518_s20, %s1938_s20   ;;  %s1435_s19 = sphi %s1516_s19, %s1943_s19   ;;  %s1431_s18 = sphi %s1514_s18, %s1942_s18  }
  0x11   : > { %1914 = sst [smem:[#allocation17_spill]] %s1443_s21  ;;  %p977_p0 = scmp.ge.s32.totalorder %s1471_s28, 1 }
  0x12   : > { %p1904_p1 = scmp.eq.s32.totalorder %s1570_s29, 0  ;;  %p193_p2 = scmp.lt.s32.totalorder %s1471_s28, 5 }
  0x13   : > { %s1915_s1 = sld [smem:[#allocation23_spill]]  ;;  %s1473_s9 = smov [#allocation5]  }
  0x14   : > { %p1578_p3 = pnand %p977_p0, %p193_p2  ;;  %s206_s10 = sshll.u32 %s1473_s9, 4  ;;  %s207_s10 = int_to_ptr.vmem [resolvable:$true] %s206_s10 }
  0x15   : > { %s1917_s2 = sld [smem:[#allocation24_spill]]  ;;  %s1474_s14 = smov 128  }
  0x16   : > { %p1043_p4 = pneg %p1578_p3  ;;  %s1475_s15 = smov 8  }
  0x17   : > { %s1476_s16 = smov [#allocation7]   ;;  %s1902_s30 = sadd.s32 4294967294, %s1471_s28  }
  0x18   : > { %p1044_p5 = pnand %p1043_p4, %p1904_p1  ;;  %s221_s17 = sshll.u32 %s1476_s16, 4  ;;  %s222_s17 = int_to_ptr.vmem [resolvable:$true] %s221_s17 }
  0x19   : > { %s204_s7 = sshll.u32 %s1915_s1, 4  ;;  %s35_s6 = sadd.s32 1, %s1463_s26  ;;  %s205_s7 = int_to_ptr.hbm [resolvable:$true] %s204_s7 }
  0x1a   : > { %1046 = dma.hbm_to_vmem [thread:$0]  (!%p1044_p5), %s205_s7, 256, %s207_s10, [#allocation6], %s1474_s14, %s1474_s14, %s1475_s15  }
  0x1b   : > { %s219_s13 = sshll.u32 %s1917_s2, 4  ;;  %p36_p6 = scmp.ge.s32.totalorder %s35_s6, 2  ;;  %s220_s13 = int_to_ptr.hbm [resolvable:$true] %s219_s13 }
  0x1c   : > { %1049 = dma.hbm_to_vmem [thread:$0]  (!%p1044_p5), %s220_s13, 32, %s222_s17, [#allocation6]  }
  0x1d   : > { %s38_s9 = sadd.s32 1, %s1467_s27  ;;  %s47_s11 = sadd.s32 1, %s1451_s23 }
  0x1e   : > { %p54_p7 = scmp.ne.s32.totalorder %s1451_s23, %s1447_s22  ;;  %s1952_s6 = smov (%p36_p6, %s35_s6), 0 }
  0x1f   : > { %1918 = sst [smem:[#allocation18_spill]] %s1952_s6  ;;  %s1954_s9 = smov (!%p36_p6, %s38_s9), %s1467_s27 }
  0x20   : > { %s43_s7 = ssub.s32 %s1463_s26, %s1952_s6  ;;  %p55_p8 = scmp.eq.s32.totalorder %s1471_s28, 0 }
  0x21   : > { %p40_p9 = scmp.ge.s32.totalorder %s1954_s9, 2  ;;  %p60_p10 = scmp.ne.s32.totalorder %s1447_s22, %s1443_s21 }
  0x22   : > { %p1603_p11 = por %p55_p8, %p54_p7  ;;  %p128_p12 = scmp.eq.s32.totalorder %s1570_s29, 3 }
  0x23   : > { %s1956_s9 = smov (%p40_p9, %s1954_s9), 0  ;;  %p1612_p13 = por %p1904_p1, %p60_p10 }
  0x24   : > { %1920 = sst [smem:[#allocation19_spill]] %s1956_s9  ;;  %p1618_p0 = por %p128_p12, %p54_p7 }
  0x25   : > { %s42_s14 = ssub.s32 %s1467_s27, %s1956_s9  ;;  %p1626_p2 = scmp.eq.s32.totalorder %s1902_s30, 3 }
  0x26   : > { %s44_s16 = sor.u32 %s43_s7, %s42_s14  ;;  %p141_p4 = scmp.eq.s32.totalorder %s42_s14, 0 }
  0x27   : > { %p45_p5 = scmp.eq.s32.totalorder %s44_s16, 0  ;;  %p1632_p6 = por %p1626_p2, %p60_p10 }
  0x28   : > { %s143_s1 = sadd.s32 1, %s1439_s20  ;;  %p153_p7 = scmp.ne.s32.totalorder %s1439_s20, %s1435_s19 }
  0x29   : > { %s1924_s17 = scalar_select %p1632_p6, 1, 0 }
  0x2a   : > { %s1640_s2 = scalar_select %p45_p5, %s1451_s23, %s47_s11  }
  0x2b   : > { %1925 = sst [smem:[#allocation20_spill]] %s1924_s17  ;;  %p1647_p8 = por %p153_p7, %p128_p12 }
  0x2c   : > { %1926 = sst [smem:[#allocation21_spill]] %s1640_s2  ;;  %p159_p9 = scmp.ne.s32.totalorder %s1435_s19, %s1431_s18 }
  0x2d   : > { %s1643_s30 = scalar_select %p141_p4, %s1439_s20, %s143_s1  }
  0x2e   : > { %p1066_p1 = scmp.lt.s32.totalorder %s1471_s28, 4  ;;  %s232_s7 = sand.u32 1, %s1451_s23  }
  0x2f   : > { %1927 = sst [smem:[#allocation22_spill]] %s1643_s30  ;;  %p1657_p10 = por %p159_p9, %p1626_p2 }
  0x30   : > { %s981_s16 = sshll.u32 %s232_s7, 2  ;;  %s982_s6 = sshll.u32 %s1467_s27, 1 }
  0x31   : > { %s240_s11 = sadd.s32 %s1463_s26, %s982_s6  ;;  %s236_s17 = scalar_lea.vmem [#allocation2], %s981_s16 }
  0x32   : > { %s983_s2 = sshll.u32 %s240_s11, 2  ;;  %s246_s1 = sshll.u32 %s236_s17, 4  ;;  %s247_s1 = int_to_ptr.vmem [resolvable:$true] %s246_s1 }
  0x33   : > { %s242_s21 = scalar_lea.hbm %s1896_s0, %s983_s2  ;;  %p1051_p12 = pnand %p1066_p1, %p1603_p11 }
  0x34   : > { %s244_s3 = sshll.u32 %s242_s21, 4  ;;  %s233_s18 = scalar_lea.sflag [#allocation3], %s232_s7  ;;  %s245_s3 = int_to_ptr.hbm [resolvable:$true] %s244_s3 }
  0x35   : > { %1053 = dma.hbm_to_vmem [thread:$0]  (!%p1051_p12), %s245_s3, 64, %s247_s1, %s233_s18  }
  0x36   : > { %255 = sbr.rel (%p1578_p3) target bundleno = 1155 (0x483), region = 32  ;;  %s1671_s6 = sand.u32 (!%p1578_p3), 1, %s1447_s22  }
  0x37   : > { %s985_s15 = sshll.u32 (!%p1578_p3), %s1671_s6, 2  ;;  %s258_s17 = scalar_lea.sflag (!%p1578_p3), [#allocation3], %s1671_s6 }
  0x38   : > { %s261_s20 = scalar_lea.vmem (!%p1578_p3), [#allocation2], %s985_s15 }
  0x3b   : > { %1414 = dma.done.wait (%p1612_p13), %s258_s17, 64  }
  0x3c   : > { %1416 = vsyncadd (%p1612_p13), %s258_s17, 4294967232  ;;  %p1930_p1 = scmp.eq.s32.totalorder %s1570_s29, 0 }
  0x3e   : > { %1418 = dma.done.wait (%p1930_p1), [#allocation6], 288   ;;  %p1931_p11 = pmov %p1930_p1 }
  0x3f   : > { %s988_s2 = sshll.u32 %s1671_s6, 3  ;;  %s299_s3 = sand.u32 1, %s1435_s19  }
  0x40   : > { %1420 = vsyncadd (%p1931_p11), [#allocation6], 4294967008  ;;  %s989_s21 = sshll.u32 %s299_s3, 5  ;;  %s1685_s8 = scalar_lea.vmem [#allocation8], %s988_s2 }
  0x41   : > { %s1687_s30 = scalar_lea.vmem [#allocation9], %s989_s21  ;;  %s1689_s10 = scalar_lea.vmem [#allocation11], %s299_s3 }
  0x42   : > { %p990_p3 = scmp.ne.s32.totalorder %s1455_s24, 0 }
  0x44   : > { %312 = sbr.rel (%p990_p3) target bundleno = 79 (0x4f), region = 48 }
  0x49   : > { %vm313_vm0 = vcmask 261120   ;;  %v1477_v0 = vmov 0.0   ;;  %vm318_vm1 = vcmask 253952  }
  0x4a   : > { %314 = vst.msk [vmem:[%s1687_s30] sm:$0xff] %vm313_vm0, %v1477_v0 }
  0x4b   : > { %315 = vst.msk [vmem:[%s1687_s30 + $0x8] sm:$0xff] %vm313_vm0, %v1477_v0 }
  0x4c   : > { %316 = vst.msk [vmem:[%s1687_s30 + $0x10] sm:$0xff] %vm313_vm0, %v1477_v0 }
  0x4d   : > { %317 = vst.msk [vmem:[%s1687_s30 + $0x18] sm:$0xff] %vm313_vm0, %v1477_v0 }
  0x4e   : > { %319 = vst.msk [vmem:[%s1689_s10] sm:$0x1] %vm318_vm1, %v1477_v0 }
  0x4f PF: > { %v993_v1 = vld [vmem:[#allocation5] sm:$0xf]  ;;  %v1025_v2 = vld [vmem:[#allocation5 + $0x4] sm:$0xf0]  ;;  %v1024_v4 = vld [vmem:[#allocation5 + $0x4] sm:$0xf]  ;;  %v392_v8 = vlaneseq  ;;  %s808_s21 = scalar_lea.hbm %s1901_s5, %s1459_s25 }
  0x50   : > { %v994_v3 = vor.u32 %v1025_v2, %v993_v1  ;;  %v995_v5 = vld [vmem:[#allocation5 + $0x8] sm:$0xf0]  ;;  %v320_v7 = vld [vmem:[%s261_s20] sm:$0xf]  ;;  %vm339_vm2 = vcmask 130048   ;;  %s1002_s12 = sshll.u32 %s1455_s24, 3 }
  0x51   : > { %v998_v6 = vor.u32 %v1024_v4, %v995_v5  ;;  %v1697_v9 = vshrl.u32 %v392_v8, 7  ;;  %v323_v12 = vld [vmem:[#allocation7] sm:$0x3]  ;;  %v1704_v31 = vand.u32 127, %v392_v8  ;;  %v394_v32 = vstv %s1002_s12  ;;  %s1479_s7 = smov 96   ;;  %s1480_s16 = smov 32  }
  0x52   : > { %350 = vmatpush.bf16.msra.mxu1 %v994_v3  ;;  %v326_v13 = vperm.slane %v323_v12, 1  ;;  %v1478_v36 = vmov 0.0   ;;  %vm409_vm8 = vcmask 64512   ;;  %v325_v50 = vperm.slane %v323_v12, 0  ;;  %s1481_s11 = smov 64   ;;  %s1026_s1 = sshll.u32 %s1459_s25, 5 }
  0x53   : > { %1169 = vset.pattern.permute.xlu0 %v1697_v9  ;;  %v395_v33 = vadd.s32 %v394_v32, %v1697_v9  ;;  %vm406_vm7 = vcmp.le.s32.totalorder %v1704_v31, %v1697_v9  ;;  %vm452_vm10 = vcmask 261120   ;;  %vm741_vm11 = vcmask 1048320   ;;  %v1743_v32 = vld [vmem:[%s1687_s30 + $0x10] sm:$0xff]  ;;  %s761_s18 = sand.u32 1, %s1570_s29   ;;  %s793_s20 = scalar_lea.hbm %s1900_s4, %s1026_s1 }
  0x54   : > { %v1003_v37 = vsel %vm406_vm7, 1.0, %v1478_v36  ;;  %vm535_vm12 = vcmp.lt.s32.totalorder %v1704_v31, %v1697_v9  ;;  %vm754_vm13 = vcmask 261127   ;;  %v633_v31 = vadd.s32 16, %v1697_v9  ;;  %s794_s12 = sshll.u32 %s1687_s30, 4  ;;  %s1807_s29 = scalar_lea.sflag [#allocation10], %s761_s18  ;;  %s795_s12 = int_to_ptr.vmem [resolvable:$true] %s794_s12 }
  0x55   : > { %999 = vmatmul.msk.bf16.vlgmr.msra.gmra.mxu1 %vm339_vm2, %v320_v7  ;;  %vm396_vm9 = vcmp.lt.s32.totalorder %v395_v33, 13  ;;  %v1718_v57 = vld [vmem:[%s1689_s10] ss:$0 sm:$0xff]  ;;  %v1747_v33 = vld [vmem:[%s1687_s30 + $0x8] sm:$0xff] }
  0x56   : > { %363 = vmatpush.bf16.msrb.mxu1 %v998_v6 }
  0x65   : > { %1000 = vmatmul.msk.bf16.vlgmr.msrb.gmra.mxu1 %vm339_vm2, %v320_v7 }
  0xd2   : > { %v352_v10 = vpop.f32.mrf.mxu1 }
  0xd3   : > { %v353_v52 = vadd.f32 %v352_v10, %v325_v50 }
  0xd5   : > { %v370_v63 = vmul.f32 1.442695, %v353_v52  ;;  %v369_v6 = vmul.f32 0.17677669, %v353_v52 }
  0xda   : > { %v354_v11 = vpop.f32.mrf.mxu1 }
  0xe2   : > { %v365_v14 = vpop.f32.mrf.mxu1 }
  0xe3   : > { %v366_v15 = vadd.f32 %v365_v14, %v326_v13 }
  0xe5   : > { %v1001_v16 = vmul.f32 -1.442695, %v366_v15 }
  0xe7   : > { %1175 = vpow2.f32 %v1001_v16 }
  0xea   : > { %v367_v17 = vpop.f32.mrf.mxu1 }
  0xed   : > { %v1176_v18 = vpop.eup %1175 }
  0xee   : > { %v375_v19 = vadd.f32 1.0, %v1176_v18 }
  0xf0   : > { %1177 = vrcp.f32 %v375_v19  ;;  %v387_v23 = vand.u32 2147483648, %v375_v19  ;;  %v385_v25 = vand.u32 2147483647, %v375_v19  ;;  %vm381_vm4 = vweird.f32 %v375_v19 }
  0xf2   : > { %v388_v27 = vor.u32 1.1754944e-38, %v387_v23  ;;  %vm386_vm6 = vcmp.eq.f32.partialorder %v385_v25, 8.507059e+37 }
  0xf6   : > { %v1178_v20 = vpop.eup %1177 }
  0xf7   : > { %v377_v21 = vmul.f32 %v1178_v20, %v375_v19  ;;  %vm382_vm3 = vweird.f32 %v1178_v20 }
  0xf8   : > { %vm383_vm5 = vmor %vm381_vm4, %vm382_vm3 }
  0xf9   : > { %v378_v22 = vsub.f32 1.0, %v377_v21 }
  0xfb   : > { %v379_v24 = vmul.f32 %v1178_v20, %v378_v22 }
  0xfd   : > { %v380_v26 = vadd.f32 %v1178_v20, %v379_v24 }
  0xff   : > { %v384_v28 = vsel %vm383_vm5, %v1178_v20, %v380_v26 }
 0x100   : > { %v1700_v29 = vsel %vm386_vm6, %v388_v27, %v384_v28  ;;  %v1738_v28 = vld [vmem:[%s1687_s30 + $0x18] sm:$0xff] }
 0x101   : > { %v400_v30 = vmax.f32 %v1700_v29, 1e-30 }
 0x103   : > { %1179 = vlog2.f32 %v400_v30 }
 0x109   : > { %v1180_v34 = vpop.eup %1179 }
 0x10a   : > { %v402_v35 = vmul.f32 0.6931472, %v1180_v34 }
 0x10c   : > { %v403_v38 = vsel %vm396_vm9, %v402_v35, 0.0  ;;  %1004 = vmatpush.msk.msra.mxu2 %vm396_vm9, %v402_v35  ;;  %v442_v35 = vld [vmem:[%s1687_s30] sm:$0xff] }
 0x10d   : > { %1005 = vmatmul.msk.f32.vlgmr.msra.gmra.mxu2 %vm409_vm8, %v1003_v37 }
 0x190   : > { %v430_v39 = vpop.f32.mrf.mxu2 }
 0x191   : > { %v456_v40 = vmul.f32 0.5, %v430_v39  ;;  %v433_v41 = vsub.f32 %v430_v39, %v403_v38  ;;  %v436_v47 = vperm.slane %v430_v39, 7  ;;  %v440_v60 = vmul.f32 1.442695, %v430_v39 }
 0x193   : > { %v457_v42 = vperm.slane %v456_v40, 7  ;;  %v437_v49 = vsub.f32 %v436_v47, %v430_v39  ;;  %v434_v54 = vmul.f32 1.442695, %v433_v41 }
 0x195   : > { %v463_v43 = vsub.f32 %v457_v42, %v430_v39  ;;  %v458_v44 = vsub.f32 %v433_v41, %v457_v42  ;;  %v438_v51 = vmul.f32 1.442695, %v437_v49 }
 0x197   : > { %v464_v45 = vmin.f32 %v463_v43, 60.0  ;;  %v459_v11 = vmin.f32 %v458_v44, 60.0  ;;  %v627_v44 = vadd.s32 8, %v1697_v9 }
 0x199   : > { %v465_v46 = vmul.f32 1.442695, %v464_v45  ;;  %v460_v12 = vmul.f32 1.442695, %v459_v11  ;;  %1170 = vset.pattern.permute.xlu1 %v627_v44 }
 0x19b   : > { %1181 = vpow2.f32 %v465_v46 }
 0x19c   : > { %1183 = vpow2.f32 %v438_v51  ;;  %v639_v51 = vadd.s32 24, %v1697_v9 }
 0x19d   : > { %1185 = vpow2.f32 %v434_v54 }
 0x19e   : > { %1187 = vpow2.f32 %v440_v60 }
 0x19f   : > { %1189 = vpow2.f32 %v370_v63 }
 0x1a0   : > { %1191 = vpow2.f32 %v460_v12 }
 0x1a1   : > { %v1182_v48 = vpop.eup %1181 }
 0x1a2   : > { %468 = vrot.lane.b32.xlu0 %v1182_v48, %s1479_s7  ;;  %v1184_v53 = vpop.eup %1183 }
 0x1a3   : > { %v1186_v55 = vpop.eup %1185 }
 0x1a4   : > { %v1715_v56 = vmul.f32 %v1186_v55, %v353_v52  ;;  %v1723_v61 = vpop.eup %1187 }
 0x1a5   : > { %v1726_v62 = vperm.slane %v1723_v61, 7  ;;  %v1190_v1 = vpop.eup %1189  ;;  %v738_v40 = vmul.f32 %v1723_v61, %v1718_v57 }
 0x1a6   : > { %v451_v58 = vmul.f32 %v1718_v57, %v1715_v56  ;;  %v399_v2 = vsel %vm396_vm9, %v1190_v1, 0.0  ;;  %v1192_v13 = vpop.eup %1191 }
 0x1a7   : > { %v462_v15 = vmul.f32 %v1192_v13, %v353_v52 }
 0x1a8   : > { %v453_v59 = vsel %vm452_vm10, %v451_v58, 0.0 }
 0x1aa   : > { %473 = vrot.lane.b32.xlu0 %v353_v52, %s1480_s16 }
 0x1b2   : > { %649 = vrot.lane.b32.xlu0 %v1184_v53, %s1479_s7 }
 0x1dc   : > { %454 = vadd.xlane.f32.xlu0 %v453_v59 }
 0x1f0   : > { %623 = vperm.xlu0 %1169, %v1726_v62  }
 0x1f8   : > { %1173 = vset.pattern.permute.xlu0 %v639_v51 }
 0x214   : > { %v469_v0 = vpop.permute.xlu0 %468 }
 0x215   : > { %v471_v3 = vmul.f32 %v469_v0, %v399_v2 }
 0x21c   : > { %v474_v4 = vpop.permute.xlu0 %473 }
 0x21d   : > { %v476_v5 = vmul.f32 %v474_v4, %v471_v3  ;;  %v647_v8 = vmul.f32 %v474_v4, %v399_v2 }
 0x21f   : > { %478 = vrot.lane.b32.xlu1 %v476_v5, %s1480_s16 }
 0x224   : > { %v650_v7 = vpop.permute.xlu0 %649 }
 0x225   : > { %v652_v10 = vmul.f32 %v650_v7, %v647_v8 }
 0x227   : > { %506 = vrot.lane.b32.xlu1 %v369_v6, %s1481_s11  ;;  %s1800_s11 = sshll.u32 %s808_s21, 4  ;;  %s813_s11 = int_to_ptr.hbm [resolvable:$true] %s1800_s11 }
 0x22f   : > { %654 = vrot.lane.b32.xlu1 %v652_v10, %s1480_s16 }
 0x24f   : > { %v455_v36 = vpop.xlane.xlu0 %454 }
 0x262   : > { %v624_v37 = vpop.permute.xlu0 %623 }
 0x263   : > { %v643_v55 = vmul.f32 %v624_v37, %v442_v35 }
 0x291   : > { %v479_v14 = vpop.permute.xlu1 %478 }
 0x292   : > { %1006 = vmatpush.xpose.msk.msra.mxu3 %vm452_vm10, %v479_v14 }
 0x295   : > { %1007 = vmatmul.msk.f32.vlgmr.msra.gmra.mxu3 %vm452_vm10, %v462_v15 }
 0x299   : > { %v507_v16 = vpop.permute.xlu1 %506 }
 0x29a   : > { %v739_v17 = vmul.f32 %v507_v16, %v399_v2  ;;  %v509_v18 = vmul.f32 %v507_v16, %v471_v3 }
 0x29c   : > { %v740_v19 = vmul.f32 %v739_v17, %v650_v7  ;;  %511 = vrot.lane.b32.xlu2 %v509_v18, %s1480_s16 }
 0x29e   : > { %v742_v20 = vsel %vm741_vm11, %v740_v19, 0.0 }
 0x29f   : > { %v743_v21 = vrot.slane %v742_v20, 4 }
 0x2a1   : > { %v744_v22 = vadd.f32 %v743_v21, %v742_v20  ;;  %v655_v27 = vpop.permute.xlu1 %654 }
 0x2a3   : > { %v745_v23 = vrot.slane %v744_v22, 2 }
 0x2a4   : > { %538 = vrot.lane.b32.xlu2 %v369_v6, %s1479_s7 }
 0x2a5   : > { %v746_v24 = vadd.f32 %v745_v23, %v744_v22 }
 0x2a7   : > { %v747_v25 = vrot.slane %v746_v24, 1 }
 0x2a9   : > { %v748_v26 = vadd.f32 %v747_v25, %v746_v24 }
 0x2ab   : > { %750 = vrot.lane.b32.xlu0 %v748_v26, %s1480_s16 }
 0x2ca   : > { %657 = vxpose.xlu2.b32.start.end [1/1] (short) (narrow) %v655_v27, 32 }
 0x2f6   : > { %v512_v30 = vpop.permute.xlu2 %511 }
 0x2f7   : > { %1008 = vmatpush.xpose.msk.msrb.mxu2 %vm452_vm10, %v512_v30 }
 0x2fa   : > { %1009 = vmatmul.msk.f32.vlgmr.msrb.gmra.mxu2 %vm452_vm10, %v462_v15 }
 0x2fb   : > { %585 = vmatpush.msra.mxu2 %v1738_v28 }
 0x2fd   : > { %586 = vmatpush.msra.mxu2 %v1743_v32 }
 0x2fe   : > { %v539_v34 = vpop.permute.xlu2 %538 }
 0x2ff   : > { %587 = vmatpush.msra.mxu2 %v1747_v33  ;;  %559 = vmatpush.msrb.mxu3 %v539_v34 }
 0x300   : > { %716 = vmatpush.msra.mxu0 %v539_v34 }
 0x301   : > { %588 = vmatpush.msra.mxu2 %v442_v35 }
 0x302   : > { %1011 = vmatmul.msk.f32.vlgmr.msra.gmra.mxu2 %vm452_vm10, %v1715_v56 }
 0x318   : > { %v502_v38 = vpop.f32.mrf.mxu3 }
 0x319   : > { %v536_v39 = vsel %vm535_vm12, %v502_v38, 0.0 }
 0x31a   : > { %1010 = vmatmul.msk.f32.vlgmr.msrb.gmra.mxu3 %vm409_vm8, %v536_v39 }
 0x31d   : > { %v751_v41 = vpop.permute.xlu0 %750 }
 0x31e   : > { %v753_v42 = vadd.f32 %v751_v41, %v738_v40 }
 0x320   : > { %755 = vst.msk [vmem:[%s1689_s10 - $0x7] sm:$0x80] %vm754_vm13, %v753_v42 }
 0x363   : > { %v673_v43 = vpop.trf.xlu2 }
 0x364   : > { %1012 = vmatmul.msk.f32.vlgmr.msra.gmra.mxu0 %vm409_vm8, %v673_v43 }
 0x36b   : > { %v674_v45 = vpop.trf.xlu2 }
 0x36c   : > { %1013 = vmatmul.msk.f32.gmra.mxu0 %vm409_vm8, %v674_v45 }
 0x373   : > { %v675_v48 = vpop.trf.xlu2 }
 0x374   : > { %1014 = vmatmul.msk.f32.gmra.mxu0 %vm409_vm8, %v675_v48 }
 0x37b   : > { %v676_v50 = vpop.trf.xlu2 }
 0x37c   : > { %1015 = vmatmul.msk.f32.gmra.mxu0 %vm409_vm8, %v676_v50 }
 0x37d   : > { %v532_v46 = vpop.f32.mrf.mxu2 }
 0x37e   : > { %v537_v47 = vsel %vm535_vm12, %v532_v46, 0.0 }
 0x37f   : > { %v564_v49 = vsel %vm409_vm8, %v537_v47, 0.0 }
 0x380   : > { %565 = vadd.xlane.f32.xlu1 %v564_v49 }
 0x385   : > { %v590_v52 = vpop.f32.mrf.mxu2 }
 0x399   : > { %629 = vperm.xlu1 %1170, %v1726_v62  }
 0x39d   : > { %v561_v53 = vpop.f32.mrf.mxu3 }
 0x39e   : > { %v591_v54 = vadd.f32 %v590_v52, %v561_v53 }
 0x3a0   : > { %594 = vrot.lane.b32.xlu2 %v591_v54, %s1480_s16  ;;  %s810_s16 = sshll.u32 %s1689_s10, 4  ;;  %s1802_s16 = int_to_ptr.vmem [resolvable:$true] %s810_s16 }
 0x3a1   : > { %1171 = vset.pattern.permute.xlu1 %v633_v31 }
 0x3a9   : > { %635 = vperm.xlu1 %1171, %v1726_v62  }
 0x3b1   : > { %1172 = vset.pattern.permute.xlu1 %v639_v51 }
 0x3b9   : > { %641 = vperm.xlu1 %1172, %v1726_v62  }
 0x3e1   : > { %v718_v56 = vpop.f32.mrf.mxu0 }
 0x3e2   : > { %v730_v57 = vadd.f32 %v718_v56, %v643_v55 }
 0x3e4   : > { %734 = vst.msk [vmem:[%s1687_s30] sm:$0xff] %vm452_vm10, %v730_v57 }
 0x3e9   : > { %v721_v12 = vpop.f32.mrf.mxu0 }
 0x3f1   : > { %v724_v16 = vpop.f32.mrf.mxu0 }
 0x3f3   : > { %v566_v58 = vpop.xlane.xlu1 %565 }
 0x3f4   : > { %v567_v59 = vadd.f32 %v566_v58, %v455_v36 }
 0x3f6   : > { %v568_v60 = vand.u32 2147483647, %v567_v59 }
 0x3f8   : > { %v569_v61 = vmax.f32 %v568_v60, 1.0 }
 0x3f9   : > { %v727_v19 = vpop.f32.mrf.mxu0 }
 0x3fa   : > { %1193 = vrcp.f32 %v569_v61  ;;  %v609_v1 = vand.u32 2147483648, %v569_v61  ;;  %v607_v3 = vand.u32 2147483647, %v569_v61  ;;  %v595_v4 = vpop.permute.xlu2 %594  ;;  %vm603_vm15 = vweird.f32 %v569_v61 }
 0x3fb   : > { %v597_v7 = vmul.f32 %v595_v4, %v1700_v29 }
 0x3fc   : > { %v610_v5 = vor.u32 1.1754944e-38, %v609_v1  ;;  %vm608_vm1 = vcmp.eq.f32.partialorder %v607_v3, 8.507059e+37 }
 0x400   : > { %v1194_v9 = vpop.eup %1193 }
 0x401   : > { %v599_v63 = vmul.f32 %v1194_v9, %v569_v61  ;;  %vm604_vm14 = vweird.f32 %v1194_v9 }
 0x402   : > { %vm605_vm0 = vmor %vm603_vm15, %vm604_vm14 }
 0x403   : > { %v600_v0 = vsub.f32 1.0, %v599_v63 }
 0x405   : > { %v601_v2 = vmul.f32 %v1194_v9, %v600_v0 }
 0x407   : > { %v602_v62 = vadd.f32 %v1194_v9, %v601_v2 }
 0x409   : > { %v606_v6 = vsel %vm605_vm0, %v1194_v9, %v602_v62 }
 0x40a   : > { %v611_v8 = vsel %vm608_vm1, %v610_v5, %v606_v6 }
 0x40b   : > { %v612_v10 = vmul.f32 %v611_v8, %v597_v7  ;;  %v630_v11 = vpop.permute.xlu1 %629 }
 0x40c   : > { %v644_v13 = vmul.f32 %v630_v11, %v1747_v33 }
 0x40d   : > { %614 = vrot.lane.b32.xlu1 %v612_v10, %s1479_s7  ;;  %s796_s7 = sshll.u32 %s793_s20, 4  ;;  %s1305_s20 = scalar_lea.hbm %s1900_s4, 64  ;;  %s797_s7 = int_to_ptr.hbm [resolvable:$true] %s796_s7 }
 0x40e   : > { %v731_v14 = vadd.f32 %v721_v12, %v644_v13  ;;  %s1299_s1 = sshra.s32 %s797_s7, 4  ;;  %s1300_s1 = int_to_ptr.hbm [resolvable:$true] %s1299_s1 }
 0x40f   : > { %s1301_s15 = scalar_lea.hbm %s1300_s1, 32  ;;  %p1306_p5 = scmp.lt.s32.totalorder %s1300_s1, %s1900_s4 }
 0x410   : > { %735 = vst.msk [vmem:[%s1687_s30 + $0x8] sm:$0xff] %vm452_vm10, %v731_v14  ;;  %p1302_p13 = scmp.ne.s32.totalorder %s1300_s1, %s1301_s15  ;;  %p1307_p7 = scmp.lt.s32.totalorder %s1305_s20, %s1301_s15 }
 0x412   : > { %p1303_p2 = pnand %p1302_p13, %p1647_p8  ;;  %p1308_p9 = por %p1307_p7, %p1306_p5 }
 0x414   : > { %p1304_p4 = pneg %p1303_p2 }
 0x416   : > { %p1309_p12 = pnand %p1308_p9, %p1304_p4 }
 0x41b   : > { %v636_v15 = vpop.permute.xlu1 %635 }
 0x41c   : > { %v645_v17 = vmul.f32 %v636_v15, %v1743_v32 }
 0x41e   : > { %v732_v18 = vadd.f32 %v724_v16, %v645_v17 }
 0x420   : > { %736 = vst.msk [vmem:[%s1687_s30 + $0x10] sm:$0xff] %vm452_vm10, %v732_v18 }
 0x42b   : > { %v642_v29 = vpop.permute.xlu1 %641 }
 0x42c   : > { %v646_v20 = vmul.f32 %v642_v29, %v1738_v28 }
 0x42e   : > { %v733_v21 = vadd.f32 %v727_v19, %v646_v20 }
 0x430   : > { %737 = vst.msk [vmem:[%s1687_s30 + $0x18] sm:$0xff] %vm452_vm10, %v733_v21 }
 0x431   : > { %1312 = shalt.err (!%p1309_p12)
}
 0x432   : > { %s1482_s30 = smov 128   ;;  %s1483_s18 = smov 8  }
 0x433   : > { %1038 = dma.vmem_to_hbm [thread:$0]  (%p1647_p8), %s795_s12, 512, %s797_s7, %s1807_s29, %s1482_s30, %s1482_s30, %s1483_s18  }
 0x434   : > { %s1327_s21 = sshra.s32 %s813_s11, 4  ;;  %s1333_s17 = scalar_lea.hbm %s1901_s5, 2  ;;  %s1328_s21 = int_to_ptr.hbm [resolvable:$true] %s1327_s21 }
 0x435   : > { %s1329_s10 = scalar_lea.hbm %s1328_s21, 1  ;;  %p1334_p13 = scmp.lt.s32.totalorder %s1328_s21, %s1901_s5 }
 0x436   : > { %p1330_p1 = scmp.ne.s32.totalorder %s1328_s21, %s1329_s10  ;;  %p1335_p2 = scmp.lt.s32.totalorder %s1333_s17, %s1329_s10 }
 0x438   : > { %p1331_p11 = pnand %p1330_p1, %p1647_p8  ;;  %p1336_p4 = por %p1335_p2, %p1334_p13 }
 0x43a   : > { %p1332_p3 = pneg %p1331_p11 }
 0x43c   : > { %p1337_p5 = pnand %p1336_p4, %p1332_p3 }
 0x43e   : > { %1340 = shalt.err (!%p1337_p5)
}
 0x43f   : > { %1039 = dma.vmem_to_hbm [thread:$0]  (%p1647_p8), %s1802_s16, 16, %s813_s11, %s1807_s29  }
 0x440   : > { %s1018_s12 = sshll.u32 %s1459_s25, 1  ;;  %s1932_s21 = sld [smem:[#allocation25_spill]] }
 0x441   : > { %s776_s7 = sadd.s32 %s1455_s24, %s1018_s12  ;;  %s780_s15 = sshll.u32 %s1685_s8, 4  ;;  %s781_s15 = int_to_ptr.vmem [resolvable:$true] %s780_s15 }
 0x442   : > { %s1019_s3 = sshll.u32 %s776_s7, 3  ;;  %s757_s17 = scalar_lea.sflag [#allocation4], %s1671_s6 }
 0x446   : > { %s1933_s10 = smov %s1932_s21  ;;  %s778_s1 = scalar_lea.hbm %s1932_s21, %s1019_s3 }
 0x447   : > { %s782_s9 = sshll.u32 %s778_s1, 4  ;;  %s1361_s16 = scalar_lea.hbm %s1933_s10, 32  ;;  %s783_s9 = int_to_ptr.hbm [resolvable:$true] %s782_s9 }
 0x448   : > { %s1355_s20 = sshra.s32 %s783_s9, 4  ;;  %s1356_s20 = int_to_ptr.hbm [resolvable:$true] %s1355_s20 }
 0x449   : > { %s1357_s2 = scalar_lea.hbm %s1356_s20, 8  ;;  %p1362_p12 = scmp.lt.s32.totalorder %s1356_s20, %s1933_s10 }
 0x44a   : > { %p1358_p8 = scmp.ne.s32.totalorder %s1356_s20, %s1357_s2  ;;  %p1363_p1 = scmp.lt.s32.totalorder %s1361_s16, %s1357_s2 }
 0x44c   : > { %p1359_p7 = pnand %p1358_p8, %p1618_p0  ;;  %p1364_p11 = por %p1363_p1, %p1362_p12 }
 0x44e   : > { %p1360_p9 = pneg %p1359_p7 }
 0x450   : > { %p1365_p3 = pnand %p1364_p11, %p1360_p9 }
 0x47f   : > { %v615_v22 = vpop.permute.xlu1 %614 }
 0x480   : > { %617 = vst.msk [vmem:[%s1685_s8] sm:$0xff] %vm452_vm10, %v615_v22 }
 0x481   : > { %1368 = shalt.err (!%p1365_p3)
}
 0x482   : > { %1037 = dma.vmem_to_hbm [thread:$0]  (%p1618_p0), %s781_s15, 128, %s783_s9, %s757_s17  }
 0x483 PF: > { %s1934_s6 = sld [smem:[#allocation17_spill]]  ;;  %p1069_p13 = scmp.ge.s32.totalorder %s1471_s28, 2 }
 0x485   : > { %p1055_p2 = pnand %p1069_p13, %p1632_p6 }
 0x487   : > { %p1056_p4 = pneg %p1055_p2 }
 0x489   : > { %s824_s12 = sand.u32 1, %s1934_s6  }
 0x48a   : > { %s825_s7 = scalar_lea.sflag [#allocation4], %s824_s12 }
 0x48b   : > { %1422 = dma.done.wait (%p1056_p4), %s825_s7, 128  }
 0x48c   : > { %1424 = vsyncadd (%p1056_p4), %s825_s7, 4294967168  ;;  %s1936_s3 = sadd.s32 4294967294, %s1471_s28   ;;  %p1058_p5 = pnand %p1069_p13, %p1657_p10 }
 0x48d   : > { %s834_s30 = sand.u32 1, %s1936_s3  }
 0x48e   : > { %p1059_p8 = pneg %p1058_p5  ;;  %s835_s13 = scalar_lea.sflag [#allocation10], %s834_s30 }
 0x490   : > { %1426 = dma.done.wait (%p1059_p8), %s835_s13, 528  }
 0x491   : > { %1428 = vsyncadd (%p1059_p8), %s835_s13, 4294966768  ;;  %s26_s28 = sadd.s32 1, %s1471_s28   ;;  %s1937_s21 = sld [smem:[#allocation16_spill]] }
 0x492   : > { %p23_p0 = scmp.ge.s32.totalorder %s26_s28, 6   ;;  %s1938_s20 = sld [smem:[#allocation22_spill]] }
 0x493   : > { %s1939_s1 = sld [smem:[#allocation21_spill]]  ;;  %s1942_s18 = smov %s1435_s19 }
 0x494   : > { %s1940_s15 = sld [smem:[#allocation18_spill]]  ;;  %s1947_s24 = smov %s1463_s26 }
 0x495   : > { %s1941_s9 = sld [smem:[#allocation19_spill]]  ;;  %s1948_s25 = smov %s1467_s27 }
 0x497   : > { %s1943_s19 = smov %s1937_s21  ;;  %s1944_s21 = smov %s1447_s22 }
 0x498   : > { %s1945_s22 = smov %s1451_s23  ;;  %25 = sbr.rel (!%p23_p0) target bundleno = 16 (0x10), region = 121 }
 0x499   : > { %s1946_s23 = smov %s1939_s1 }
 0x49a   : > { %s1949_s26 = smov %s1940_s15 }
 0x49b   : > { %s1950_s27 = smov %s1941_s9 }
 0x49d   :  { %850 = vsyncpa [#allocation3], 1 }
 0x49e   :  { %852 = vsyncpa [#allocation3 + $0x1], 1 }
 0x49f   :  { %853 = vsyncpa [#allocation6], 1 }
 0x4a0   :  { %854 = vsyncpa [#allocation4], 1 }
 0x4a1   :  { %856 = vsyncpa [#allocation4 + $0x1], 1 }
 0x4a2   :  { %857 = vsyncpa [#allocation10], 1 }
 0x4a3   :  { %859 = vsyncpa [#allocation10 + $0x1], 1 }

</bundles_post_ra>
